<compile_context>
chip_gen: v5e
topology: v5e:2x2
jax: 0.10.0
libtpu: 0.0.40
codegen_flags: <defaults>
</compile_context>

<pallas_src>
import functools
import math

import jax
import jax.numpy as jnp
from jax.experimental import pallas as pl
from jax.experimental.pallas import tpu as pltpu

_LANE = 128
_SUBLANE = 8


def _round_up(x, m):
    return ((x + m - 1) // m) * m


def _pick_tile(n_pad):
    """Largest row/K tile in {1024,512,256,128} dividing n_pad (n_pad % 128 == 0)."""
    for t in (1024, 512, 256, 128):
        if n_pad % t == 0:
            return t
    return n_pad


def _tpu_defaults():
    """Generation-aware scoped-VMEM limit and fused/tiled crossover."""
    kind = ""
    try:
        kind = jax.devices()[0].device_kind.lower()
    except Exception:
        pass
    if "7x" in kind or "v7" in kind:
        # 64 MiB VMEM/TC, 2 TCs: prefer the row-parallel tiled path early.
        return {"vmem_limit": 48 * 1024 * 1024, "prefer_tiled_from": 512}
    if "v6" in kind:
        return {"vmem_limit": 100 * 1024 * 1024, "prefer_tiled_from": 4096}
    if "v5 lite" in kind or "v5e" in kind or "v5lite" in kind:
        return {"vmem_limit": 100 * 1024 * 1024, "prefer_tiled_from": 4096}
    # Unknown / other (v4, v5p, emulator): conservative.
    return {"vmem_limit": 32 * 1024 * 1024, "prefer_tiled_from": 1024}


# ----------------------------------------------------------------------------
# Linear (fc) kernel: y = relu?(x @ W + b), tiled over node rows.
# ----------------------------------------------------------------------------
def _linear_kernel(x_ref, w_ref, b_ref, o_ref, *, relu):
    y = jnp.dot(x_ref[...], w_ref[...], preferred_element_type=jnp.float32)
    y = y + b_ref[...]                 # [1, Fout] broadcasts over rows
    if relu:
        y = jnp.maximum(y, 0.0)
    o_ref[...] = y.astype(o_ref.dtype)


def linear_pallas(x, w, b, *, relu=False, row_tile=None,
                  vmem_limit=32 * 1024 * 1024):
    """x: [N_pad, Fin_pad], w: [Fin_pad, Fout_pad], b: [1, Fout_pad]."""
    N, Fin = x.shape
    Fout = w.shape[1]
    tm = row_tile or N
    assert N % tm == 0
    return pl.pallas_call(
        functools.partial(_linear_kernel, relu=relu),
        out_shape=jax.ShapeDtypeStruct((N, Fout), jnp.float32),
        grid=(N // tm,),
        in_specs=[
            pl.BlockSpec((tm, Fin), lambda i: (i, 0)),
            pl.BlockSpec((Fin, Fout), lambda i: (0, 0)),
            pl.BlockSpec((1, Fout), lambda i: (0, 0)),
        ],
        out_specs=pl.BlockSpec((tm, Fout), lambda i: (i, 0)),
        compiler_params=pltpu.CompilerParams(
            dimension_semantics=("parallel",),
            vmem_limit_bytes=vmem_limit,
        ),
    )(x, w, b)


# ----------------------------------------------------------------------------
# Fused multi-layer GCNII conv kernel.
#   adj, h0: whole-array VMEM residents (single copy, no double buffering)
#   layer state: carried in o_ref (constant out index_map -> VMEM resident,
#                one HBM writeback at the end)
#   thetas: SMEM table indexed by program_id
# ----------------------------------------------------------------------------
def _gcnii_fused_kernel(theta_ref, adj_ref, h0_ref, w_ref, o_ref,
                        *, alpha, variant, hpad):
    l = pl.program_id(0)

    @pl.when(l == 0)
    def _():
        o_ref[...] = h0_ref[...]

    theta = theta_ref[l]
    h0 = h0_ref[...]
    h = o_ref[...]                                     # layer carry (f32)
    # adj@h on the MXU; if adj is bf16, cast the h operand too (f32 accumulate).
    hi = jnp.dot(adj_ref[...], h.astype(adj_ref.dtype),
                 preferred_element_type=jnp.float32)
    r = (1.0 - alpha) * hi + alpha * h0
    if variant:
        # support = concat([hi, h0], 1); avoid the concat: split W.
        sw = (jnp.dot(hi, w_ref[:hpad, :], preferred_element_type=jnp.float32)
              + jnp.dot(h0, w_ref[hpad:, :], preferred_element_type=jnp.float32))
    else:
        sw = jnp.dot(r, w_ref[...], preferred_element_type=jnp.float32)
    h_new = jnp.maximum(theta * sw + (1.0 - theta) * r, 0.0)   # act_fn = ReLU
    o_ref[...] = h_new.astype(o_ref.dtype)


def gcnii_fused(adj, h0, w_stacked, thetas, *, alpha, variant, hpad, vmem_limit):
    N_pad = adj.shape[0]
    L, Kin_pad, H_pad = w_stacked.shape
    adj_bytes = adj.dtype.itemsize
    flops = L * (2 * N_pad * N_pad * H_pad + 2 * N_pad * Kin_pad * H_pad)
    bytes_acc = (adj_bytes * N_pad * N_pad
                 + 4 * (N_pad * H_pad + L * Kin_pad * H_pad + N_pad * H_pad))
    return pl.pallas_call(
        functools.partial(_gcnii_fused_kernel, alpha=float(alpha),
                          variant=variant, hpad=hpad),
        out_shape=jax.ShapeDtypeStruct((N_pad, H_pad), jnp.float32),
        grid=(L,),
        in_specs=[
            pl.BlockSpec(memory_space=pltpu.MemorySpace.SMEM),   # thetas table
            pl.BlockSpec(memory_space=pltpu.MemorySpace.VMEM),   # adj (resident)
            pl.BlockSpec(memory_space=pltpu.MemorySpace.VMEM),   # h0  (resident)
            pl.BlockSpec((None, Kin_pad, H_pad), lambda l: (l, 0, 0)),  # W_l
        ],
        out_specs=pl.BlockSpec((N_pad, H_pad), lambda l: (0, 0)),
        compiler_params=pltpu.CompilerParams(
            dimension_semantics=("arbitrary",),
            vmem_limit_bytes=vmem_limit,
        ),
        cost_estimate=pl.CostEstimate(flops=flops, transcendentals=0,
                                      bytes_accessed=bytes_acc),
    )(thetas, adj, h0, w_stacked)


# ----------------------------------------------------------------------------
# Tiled single-layer GCNII conv kernel (row-parallel x K-reduction grid)
# ----------------------------------------------------------------------------
def _gcnii_layer_tiled_kernel(adj_ref, h_ref, h0_ref, w_ref, o_ref, acc_ref,
                              *, alpha, theta, variant, hpad):
    k = pl.program_id(1)

    @pl.when(k == 0)
    def _():
        acc_ref[...] = jnp.zeros_like(acc_ref)

    # partial hi = adj[i-block, k-block] @ h[k-block, :]  (f32 accumulate)
    acc_ref[...] += jnp.dot(adj_ref[...], h_ref[...].astype(adj_ref.dtype),
                            preferred_element_type=jnp.float32)

    @pl.when(k == pl.num_programs(1) - 1)
    def _():
        hi = acc_ref[...]
        h0 = h0_ref[...]
        r = (1.0 - alpha) * hi + alpha * h0
        if variant:
            sw = (jnp.dot(hi, w_ref[:hpad, :], preferred_element_type=jnp.float32)
                  + jnp.dot(h0, w_ref[hpad:, :], preferred_element_type=jnp.float32))
        else:
            sw = jnp.dot(r, w_ref[...], preferred_element_type=jnp.float32)
        out = theta * sw + (1.0 - theta) * r
        o_ref[...] = jnp.maximum(out, 0.0).astype(o_ref.dtype)   # act_fn = ReLU


def gcnii_layer_tiled(adj, h, h0, w, *, alpha, theta, variant, hpad, tm, tk,
                      vmem_limit):
    N_pad = adj.shape[0]
    Kin_pad, H_pad = w.shape
    assert N_pad % tm == 0 and N_pad % tk == 0
    adj_bytes = adj.dtype.itemsize
    flops = 2 * N_pad * N_pad * H_pad + 2 * N_pad * Kin_pad * H_pad
    bytes_acc = (adj_bytes * N_pad * N_pad
                 + 4 * (2 * N_pad * H_pad + Kin_pad * H_pad + N_pad * H_pad))
    return pl.pallas_call(
        functools.partial(_gcnii_layer_tiled_kernel, alpha=float(alpha),
                          theta=float(theta), variant=variant, hpad=hpad),
        out_shape=jax.ShapeDtypeStruct((N_pad, H_pad), jnp.float32),
        grid=(N_pad // tm, N_pad // tk),           # reduction axis last
        in_specs=[
            pl.BlockSpec((tm, tk), lambda i, k: (i, k)),      # adj tile
            pl.BlockSpec((tk, H_pad), lambda i, k: (k, 0)),   # h (K slab)
            pl.BlockSpec((tm, H_pad), lambda i, k: (i, 0)),   # h0 (row slab)
            pl.BlockSpec((Kin_pad, H_pad), lambda i, k: (0, 0)),
        ],
        out_specs=pl.BlockSpec((tm, H_pad), lambda i, k: (i, 0)),
        scratch_shapes=[pltpu.VMEM((tm, H_pad), jnp.float32)],
        compiler_params=pltpu.CompilerParams(
            dimension_semantics=("parallel", "arbitrary"),
            vmem_limit_bytes=vmem_limit,
        ),
        cost_estimate=pl.CostEstimate(flops=flops, transcendentals=0,
                                      bytes_accessed=bytes_acc),
    )(adj, h, h0, w)


# ----------------------------------------------------------------------------
# GCNII model: parameter init + forward orchestration (padding done here)
# ----------------------------------------------------------------------------
def init_gcnii_params(key, nfeat, nlayers, nhidden, nclass, variant):
    params = {}
    keys = jax.random.split(key, 2 * nlayers + 4)
    stdv = 1.0 / math.sqrt(nhidden)
    conv_in = 2 * nhidden if variant else nhidden
    params["conv_w"] = [
        jax.random.uniform(keys[i], (conv_in, nhidden),
                           minval=-stdv, maxval=stdv, dtype=jnp.float32)
        for i in range(nlayers)
    ]
    b0 = 1.0 / math.sqrt(nfeat)
    params["fc0_w"] = jax.random.uniform(keys[2 * nlayers], (nfeat, nhidden),
                                         minval=-b0, maxval=b0, dtype=jnp.float32)
    params["fc0_b"] = jax.random.uniform(keys[2 * nlayers + 1], (1, nhidden),
                                         minval=-b0, maxval=b0, dtype=jnp.float32)
    b1 = 1.0 / math.sqrt(nhidden)
    params["fc1_w"] = jax.random.uniform(keys[2 * nlayers + 2], (nhidden, nclass),
                                         minval=-b1, maxval=b1, dtype=jnp.float32)
    params["fc1_b"] = jax.random.uniform(keys[2 * nlayers + 3], (1, nclass),
                                         minval=-b1, maxval=b1, dtype=jnp.float32)
    return params


def gcnii_forward(params, x, adj, *, lamda, alpha, variant,
                  adj_dtype=jnp.float32, force_tiled=False, row_tile=None):
    """Returns (class logits [N, nclass], hidden embedding [N, nhidden])."""
    N, nfeat = x.shape
    H = params["conv_w"][0].shape[1]
    C = params["fc1_w"].shape[1]
    L = len(params["conv_w"])

    H_pad = _round_up(H, _LANE)
    F_pad = _round_up(nfeat, _LANE)
    C_pad = _round_up(C, _LANE)
    Kin_pad = 2 * H_pad if variant else H_pad

    cfg = _tpu_defaults()
    vmem_limit = cfg["vmem_limit"]

    # Node dim padded to a 128 multiple: lane-dense adj tiles, full MXU K.
    N_pad = _round_up(N, _LANE)
    adj_bytes = jnp.dtype(adj_dtype).itemsize

    # Fused-path VMEM footprint: adj & h0 single-copy residents, output carry,
    # per-layer W double-buffered.
    fused_vmem = (N_pad * N_pad * adj_bytes
                  + N_pad * H_pad * 4
                  + 2 * N_pad * H_pad * 4
                  + 2 * Kin_pad * H_pad * 4)
    fused = ((not force_tiled)
             and N <= cfg["prefer_tiled_from"]
             and fused_vmem <= int(0.75 * vmem_limit))

    if row_tile is not None and N_pad % row_tile == 0:
        tm = row_tile
    else:
        tm = _pick_tile(N_pad)

    # --- zero-pad inputs & params to lane-aligned shapes ----------------------
    x_p = jnp.zeros((N_pad, F_pad), jnp.float32).at[:N, :nfeat].set(x)
    adj_p = jnp.zeros((N_pad, N_pad), adj_dtype).at[:N, :N].set(
        adj.astype(adj_dtype))

    w0 = jnp.zeros((F_pad, H_pad), jnp.float32).at[:nfeat, :H].set(params["fc0_w"])
    b0 = jnp.zeros((1, H_pad), jnp.float32).at[:, :H].set(params["fc0_b"])
    w1 = jnp.zeros((H_pad, C_pad), jnp.float32).at[:H, :C].set(params["fc1_w"])
    b1 = jnp.zeros((1, C_pad), jnp.float32).at[:, :C].set(params["fc1_b"])

    def pad_conv_w(w):
        if variant:
            wt = jnp.zeros((H_pad, H_pad), jnp.float32).at[:H, :H].set(w[:H])
            wb = jnp.zeros((H_pad, H_pad), jnp.float32).at[:H, :H].set(w[H:])
            return jnp.concatenate([wt, wb], axis=0)          # [2*H_pad, H_pad]
        return jnp.zeros((H_pad, H_pad), jnp.float32).at[:H, :H].set(w)

    conv_ws = [pad_conv_w(w) for w in params["conv_w"]]
    thetas = [math.log(lamda / (i + 1) + 1.0) for i in range(L)]

    # --- forward --------------------------------------------------------------
    # dropout (eval mode) -> identity
    h0 = linear_pallas(x_p, w0, b0, relu=True, row_tile=tm,
                       vmem_limit=vmem_limit)
    # Zero the padded node rows (bias broadcast makes them relu(b0) != 0);
    # keeps the padded region inert for any row-wise reductions downstream.
    row_mask = (jnp.arange(N_pad) < N).astype(jnp.float32)[:, None]
    h0 = h0 * row_mask

    if fused:
        w_stacked = jnp.stack(conv_ws, axis=0)                # [L, Kin_pad, H_pad]
        thetas_arr = jnp.asarray(thetas, dtype=jnp.float32)   # SMEM table
        hidden = gcnii_fused(adj_p, h0, w_stacked, thetas_arr,
                             alpha=alpha, variant=variant, hpad=H_pad,
                             vmem_limit=vmem_limit)
    else:
        hidden = h0
        for th, w in zip(thetas, conv_ws):
            hidden = gcnii_layer_tiled(adj_p, hidden, h0, w,
                                       alpha=alpha, theta=th, variant=variant,
                                       hpad=H_pad, tm=tm, tk=tm,
                                       vmem_limit=vmem_limit)

    logits_p = linear_pallas(hidden, w1, b1, relu=False, row_tile=tm,
                             vmem_limit=vmem_limit)
    return logits_p[:N, :C], hidden[:N, :H]


# ----------------------------------------------------------------------------
# Pure-JAX reference
# ----------------------------------------------------------------------------
def gcnii_forward_ref(params, x, adj, *, lamda, alpha, variant):
    layer_inner = jax.nn.relu(x @ params["fc0_w"] + params["fc0_b"])
    h0 = layer_inner
    for i, w in enumerate(params["conv_w"]):
        theta = math.log(lamda / (i + 1) + 1.0)
        hi = adj @ layer_inner
        if variant:
            support = jnp.concatenate([hi, h0], axis=1)
            r = (1.0 - alpha) * hi + alpha * h0
        else:
            support = (1.0 - alpha) * hi + alpha * h0
            r = support
        layer_inner = jax.nn.relu(theta * (support @ w) + (1.0 - theta) * r)
    hidden_emb = layer_inner
    logits = hidden_emb @ params["fc1_w"] + params["fc1_b"]
    return logits, hidden_emb


def _make_graph(key, N):
    k_x, k_adj = jax.random.split(key)
    a = jax.random.uniform(k_adj, (N, N), dtype=jnp.float32)
    a = (a > 0.85).astype(jnp.float32)
    a = jnp.maximum(a, a.T) + jnp.eye(N, dtype=jnp.float32)
    adj = a / jnp.sum(a, axis=1, keepdims=True)
    return k_x, adj


# ----------------------------------------------------------------------------
# Main
# ----------------------------------------------------------------------------
if __name__ == "__main__":
    # Match kernel f32 accumulation in the pure-JAX reference.
    jax.config.update("jax_default_matmul_precision", "highest")

    key = jax.random.PRNGKey(0)
    k1, k2 = jax.random.split(key)

    # ---- Test 1: small graph, fused (adj-resident) path, variant=False ------
    N, nfeat, nhidden, nclass, nlayers = 64, 32, 32, 8, 2
    lamda, alpha, variant = 0.5, 0.1, False

    kp, kg = jax.random.split(k1)
    params = init_gcnii_params(kp, nfeat, nlayers, nhidden, nclass, variant)
    kx, adj = _make_graph(kg, N)
    x = jax.random.normal(kx, (N, nfeat), dtype=jnp.float32)

    logits, hidden = gcnii_forward(params, x, adj,
                                   lamda=lamda, alpha=alpha, variant=variant)
    jax.block_until_ready((logits, hidden))

    logits_ref, hidden_ref = gcnii_forward_ref(params, x, adj,
                                               lamda=lamda, alpha=alpha,
                                               variant=variant)
    assert logits.shape == (N, nclass) and hidden.shape == (N, nhidden)
    assert jnp.allclose(logits, logits_ref, atol=1e-3, rtol=1e-3)
    assert jnp.allclose(hidden, hidden_ref, atol=1e-3, rtol=1e-3)

    # ---- Test 2: larger graph, tiled (row-parallel + K-reduction) path,
    #              variant=True (two-dot path, no concat); f32 adj ------------
    N2, nfeat2, nhidden2, nclass2, nlayers2 = 256, 48, 32, 7, 3
    variant2 = True

    kp2, kg2 = jax.random.split(k2)
    params2 = init_gcnii_params(kp2, nfeat2, nlayers2, nhidden2, nclass2, variant2)
    kx2, adj2 = _make_graph(kg2, N2)
    x2 = jax.random.normal(kx2, (N2, nfeat2), dtype=jnp.float32)

    logits2, hidden2 = gcnii_forward(params2, x2, adj2,
                                     lamda=lamda, alpha=alpha, variant=variant2,
                                     force_tiled=True)
    jax.block_until_ready((logits2, hidden2))

    logits2_ref, hidden2_ref = gcnii_forward_ref(params2, x2, adj2,
                                                 lamda=lamda, alpha=alpha,
                                                 variant=variant2)
    assert logits2.shape == (N2, nclass2) and hidden2.shape == (N2, nhidden2)
    assert jnp.allclose(logits2, logits2_ref, atol=1e-3, rtol=1e-3)
    assert jnp.allclose(hidden2, hidden2_ref, atol=1e-3, rtol=1e-3)

    # ---- Test 3: bf16 adj fast path (halved adj HBM/VMEM traffic, bf16 MXU),
    #              validated against the f32 Pallas result at loose tolerance --
    logits2_bf, hidden2_bf = gcnii_forward(params2, x2, adj2,
                                           lamda=lamda, alpha=alpha,
                                           variant=variant2,
                                           adj_dtype=jnp.bfloat16,
                                           force_tiled=True)
    jax.block_until_ready((logits2_bf, hidden2_bf))
    assert jnp.allclose(logits2_bf, logits2, atol=3e-2, rtol=3e-2)
    assert jnp.allclose(hidden2_bf, hidden2, atol=3e-2, rtol=3e-2)

    print("KERNEL_OK")
</pallas_src>

<mosaic_0001>
module attributes {stable_mosaic.version = 11 : i64} {
  func.func @_linear_kernel(%arg0: i32, %arg1: memref<128x128xf32, #tpu.memory_space<vmem>>, %arg2: memref<128x128xf32, #tpu.memory_space<vmem>>, %arg3: memref<1x128xf32, #tpu.memory_space<vmem>>, %arg4: memref<128x128xf32, #tpu.memory_space<vmem>>) attributes {dimension_semantics = [#tpu.dimension_semantics<parallel>], iteration_bounds = array<i64: 1>, scalar_prefetch = 0 : i64, scratch_operands = 0 : i64, tpu.core_type = #tpu.core_type<tc>, window_params = [{transform_indices = @transform_0, window_bounds = array<i64: 128, 128>}, {pipeline_mode = #tpu.pipeline_mode<synchronous>, transform_indices = @transform_1, window_bounds = array<i64: 128, 128>}, {pipeline_mode = #tpu.pipeline_mode<synchronous>, transform_indices = @transform_2, window_bounds = array<i64: 1, 128>}, {transform_indices = @transform_3, window_bounds = array<i64: 128, 128>}]} {
    %c0 = arith.constant 0 : index
    %c0_0 = arith.constant 0 : index
    %0 = vector.load %arg1[%c0, %c0_0] : memref<128x128xf32, #tpu.memory_space<vmem>>, vector<128x128xf32>
    %c0_1 = arith.constant 0 : index
    %c0_2 = arith.constant 0 : index
    %1 = vector.load %arg2[%c0_1, %c0_2] : memref<128x128xf32, #tpu.memory_space<vmem>>, vector<128x128xf32>
    %cst = arith.constant dense<0.000000e+00> : vector<128x128xf32>
    %2 = tpu.matmul %0, %1, %cst {dimension_numbers = #tpu.dot_dimension_numbers<[1], [0], [0], [1], [0, 0, 1, 1], [], []>, precision = #tpu.contract_precision<fp32>} : vector<128x128xf32>, vector<128x128xf32>, vector<128x128xf32> -> vector<128x128xf32>
    %c0_3 = arith.constant 0 : index
    %c0_4 = arith.constant 0 : index
    %3 = vector.load %arg3[%c0_3, %c0_4] : memref<1x128xf32, #tpu.memory_space<vmem>>, vector<1x128xf32>
    %4 = vector.broadcast %3 : vector<1x128xf32> to vector<128x128xf32>
    %5 = arith.addf %2, %4 : vector<128x128xf32>
    %cst_5 = arith.constant 0.000000e+00 : f32
    %6 = vector.broadcast %cst_5 : f32 to vector<128x128xf32>
    %7 = arith.maximumf %5, %6 : vector<128x128xf32>
    %c0_6 = arith.constant 0 : index
    %c0_7 = arith.constant 0 : index
    %8 = vector.load %arg4[%c0_6, %c0_7] : memref<128x128xf32, #tpu.memory_space<vmem>>, vector<128x128xf32>
    tpu.vector_store %arg4[%c0_6, %c0_7], %7 {strides = array<i32>} : memref<128x128xf32, #tpu.memory_space<vmem>>, vector<128x128xf32>,
    return
  }
  func.func @transform_0(%arg0: i32) -> (i32, i32) {
    %c0_i32 = arith.constant 0 : i32
    %c0_i32_0 = arith.constant 0 : i32
    return %arg0, %c0_i32 : i32, i32
  }
  func.func @transform_1(%arg0: i32) -> (i32, i32) {
    %c0_i32 = arith.constant 0 : i32
    %c0_i32_0 = arith.constant 0 : i32
    %c0_i32_1 = arith.constant 0 : i32
    return %c0_i32, %c0_i32_0 : i32, i32
  }
  func.func @transform_2(%arg0: i32) -> (i32, i32) {
    %c0_i32 = arith.constant 0 : i32
    %c0_i32_0 = arith.constant 0 : i32
    %c0_i32_1 = arith.constant 0 : i32
    return %c0_i32, %c0_i32_0 : i32, i32
  }
  func.func @transform_3(%arg0: i32) -> (i32, i32) {
    %c0_i32 = arith.constant 0 : i32
    %c0_i32_0 = arith.constant 0 : i32
    return %arg0, %c0_i32 : i32, i32
  }
}

</mosaic_0001>

<bundles_post_ra>
// kernel: tpu_custom_call.1
= control target key start
LH: loop header
LB: loop body
LE: loop exit
PB: predicated region body
PF: predicated region fallthrough
CT: control target
= control target key end

     0   :  { %8 = vsyncpa [#allocation3], 0  ;;  %s1676_s0 = inlined_call_operand.hbm [shape: f32[128,128], index: 0, kind: input, shape index: {}]   ;;  %s1677_s1 = inlined_call_operand.hbm [shape: f32[128,128], index: 1, kind: input, shape index: {}]   ;;  %s1678_s2 = inlined_call_operand.vmem [shape: f32[1,128], index: 2, kind: input, shape index: {}]   ;;  %s1679_s3 = inlined_call_operand.hbm [shape: f32[128,128], index: 3, kind: output, shape index: {}]  }
   0x1   :  { %9 = vsyncpa [#allocation6], 0 }
   0x2   :  { %10 = vsyncpa [#allocation4], 0  ;;  %s15_s14 = sshll.u32 %s1676_s0, 4  ;;  %s1057_s15 = smov [#allocation2]   ;;  %s16_s14 = int_to_ptr.hbm [resolvable:$true] %s15_s14 }
   0x3   :  { %s17_s16 = sshll.u32 %s1057_s15, 4  ;;  %s28_s19 = sshll.u32 %s1677_s1, 4  ;;  %s18_s16 = int_to_ptr.vmem [resolvable:$true] %s17_s16  ;;  %s29_s19 = int_to_ptr.hbm [resolvable:$true] %s28_s19 }
   0x4   :  { %s1058_s20 = smov 128   ;;  %s1059_s21 = smov 8  }
   0x5   :  { %23 = dma.hbm_to_vmem [thread:$0]  %s16_s14, 2048, %s18_s16, [#allocation3], %s1058_s20, %s1058_s20, %s1059_s21  }
   0x6   :  { %s1060_s22 = smov [#allocation5]  }
   0x7   :  { %s30_s23 = sshll.u32 %s1060_s22, 4  ;;  %s31_s23 = int_to_ptr.vmem [resolvable:$true] %s30_s23 }
   0x8   :  { %36 = dma.hbm_to_vmem [thread:$0]  %s29_s19, 2048, %s31_s23, [#allocation6], %s1058_s20, %s1058_s20, %s1059_s21  }
   0x9   :  { %1051 = dma.done.wait [#allocation3], 2048  }
   0xa   :  { %1052 = vsyncadd [#allocation3], 4294965248 }
   0xb   :  { %1053 = dma.done.wait [#allocation6], 2048  }
   0xc   :  { %1054 = vsyncadd [#allocation6], 4294965248  ;;  %v78_v0 = vld [vmem:[#allocation5 + $0x78] sm:$0xff]  ;;  %v77_v1 = vld [vmem:[#allocation5 + $0x70] sm:$0xff]  ;;  %s927_s27 = sshll.u32 %s1679_s3, 4  ;;  %s928_s27 = int_to_ptr.hbm [resolvable:$true] %s927_s27 }
   0xd   :  { %v76_v2 = vld [vmem:[#allocation5 + $0x68] sm:$0xff]  ;;  %v1094_v3 = vand.u32 4294901760, %v78_v0  ;;  %v1096_v4 = vand.u32 4294901760, %v77_v1  ;;  %v75_v6 = vld [vmem:[#allocation5 + $0x60] sm:$0xff]  ;;  %v74_v7 = vld [vmem:[#allocation5 + $0x58] sm:$0xff] }
   0xe   :  { %v1098_v5 = vand.u32 4294901760, %v76_v2  ;;  %v73_v8 = vld [vmem:[#allocation5 + $0x50] sm:$0xff]  ;;  %v1100_v9 = vand.u32 4294901760, %v75_v6  ;;  %v1102_v10 = vand.u32 4294901760, %v74_v7  ;;  %v72_v12 = vld [vmem:[#allocation5 + $0x48] sm:$0xff]  ;;  %v71_v13 = vld [vmem:[#allocation5 + $0x40] sm:$0xff] }
   0xf   :  { %v1104_v11 = vand.u32 4294901760, %v73_v8  ;;  %941 = vmatpush.msra.mxu2 %v1094_v3  ;;  %v1108_v14 = vsub.f32 %v78_v0, %v1094_v3  ;;  %v1111_v15 = vsub.f32 %v77_v1, %v1096_v4  ;;  %84 = vmatpush.msra.mxu0 %v1094_v3  ;;  %v70_v17 = vld [vmem:[#allocation5 + $0x38] sm:$0xff]  ;;  %v1117_v18 = vand.u32 4294901760, %v72_v12  ;;  %v69_v25 = vld [vmem:[#allocation5 + $0x30] sm:$0xff]  ;;  %v68_v33 = vld [vmem:[#allocation5 + $0x28] sm:$0xff] }
  0x10   :  { %v1114_v16 = vsub.f32 %v76_v2, %v1098_v5  ;;  %v1120_v19 = vsub.f32 %v75_v6, %v1100_v9  ;;  %v1123_v20 = vsub.f32 %v74_v7, %v1102_v10  ;;  %v1129_v24 = vand.u32 4294901760, %v71_v13  ;;  %v67_v42 = vld [vmem:[#allocation5 + $0x20] sm:$0xff]  ;;  %v66_v49 = vld [vmem:[#allocation5 + $0x18] sm:$0xff]  ;;  %v65_v55 = vld [vmem:[#allocation5 + $0x10] sm:$0xff] }
  0x11   :  { %942 = vmatpush.msra.mxu2 %v1096_v4  ;;  %v246_v21 = vand.u32 4294901760, %v1108_v14  ;;  %v252_v22 = vand.u32 4294901760, %v1111_v15  ;;  %86 = vmatpush.msra.mxu0 %v1096_v4  ;;  %v1133_v27 = vand.u32 4294901760, %v70_v17  ;;  %v1136_v28 = vsub.f32 %v73_v8, %v1104_v11  ;;  %v55_v47 = vld [vmem:[#allocation2 + $0x40] sm:$0xff]  ;;  %v64_v62 = vld [vmem:[#allocation5 + $0x8] sm:$0xff] }
  0x12   :  { %v258_v23 = vand.u32 4294901760, %v1114_v16  ;;  %v264_v26 = vand.u32 4294901760, %v1120_v19  ;;  %v270_v32 = vand.u32 4294901760, %v1123_v20  ;;  %v1153_v35 = vand.u32 4294901760, %v69_v25  ;;  %v63_v2 = vld [vmem:[#allocation5] sm:$0xff] }
  0x13   :  { %943 = vmatpush.msra.mxu2 %v1098_v5  ;;  %v247_v29 = vsub.f32 %v1108_v14, %v246_v21  ;;  %v253_v30 = vsub.f32 %v1111_v15, %v252_v22  ;;  %88 = vmatpush.msra.mxu0 %v1098_v5  ;;  %v1156_v36 = vsub.f32 %v72_v12, %v1117_v18  ;;  %v1691_v39 = vand.u32 4294901760, %v1136_v28  ;;  %v47_v12 = vld [vmem:[#allocation2] sm:$0xff] }
  0x14   :  { %v259_v31 = vsub.f32 %v1114_v16, %v258_v23  ;;  %v265_v34 = vsub.f32 %v1120_v19, %v264_v26  ;;  %v1162_v40 = vsub.f32 %v71_v13, %v1129_v24  ;;  %v1164_v41 = vand.u32 4294901760, %v68_v33 }
  0x15   :  { %944 = vmatpush.msra.mxu2 %v1100_v9  ;;  %v248_v37 = vand.u32 4294901760, %v247_v29  ;;  %v254_v38 = vand.u32 4294901760, %v253_v30  ;;  %90 = vmatpush.msra.mxu0 %v1100_v9  ;;  %v271_v44 = vsub.f32 %v1123_v20, %v270_v32  ;;  %v1690_v45 = vand.u32 4294901760, %v1156_v36  ;;  %v56_v30 = vld [vmem:[#allocation2 + $0x48] sm:$0xff] }
  0x16   :  { %v260_v43 = vand.u32 4294901760, %v259_v31  ;;  %v1172_v46 = vsub.f32 %v70_v17, %v1133_v27  ;;  %v1687_v48 = vand.u32 4294901760, %v1162_v40  ;;  %v266_v50 = vand.u32 4294901760, %v265_v34 }
  0x17   :  { %945 = vmatpush.msra.mxu2 %v1102_v10  ;;  %957 = vmatpush.msra.mxu3 %v248_v37  ;;  %v277_v51 = vsub.f32 %v1136_v28, %v1691_v39  ;;  %v1180_v52 = vand.u32 4294901760, %v67_v42  ;;  %v1183_v53 = vsub.f32 %v69_v25, %v1153_v35  ;;  %v1187_v56 = vand.u32 4294901760, %v55_v47 }
  0x18   :  { %249 = vmatpush.msra.mxu1 %v248_v37  ;;  %92 = vmatpush.msra.mxu0 %v1102_v10  ;;  %v1684_v54 = vand.u32 4294901760, %v1172_v46  ;;  %v272_v57 = vand.u32 4294901760, %v271_v44  ;;  %v283_v58 = vsub.f32 %v1156_v36, %v1690_v45  ;;  %v1193_v59 = vand.u32 4294901760, %v66_v49  ;;  %v58_v45 = vld [vmem:[#allocation2 + $0x58] sm:$0xff] }
  0x19   :  { %946 = vmatpush.msra.mxu2 %v1104_v11  ;;  %958 = vmatpush.msra.mxu3 %v254_v38  ;;  %v1196_v60 = vsub.f32 %v68_v33, %v1164_v41  ;;  %v289_v61 = vsub.f32 %v1162_v40, %v1687_v48  ;;  %v278_v63 = vand.u32 4294901760, %v277_v51  ;;  %v1203_v0 = vand.u32 4294901760, %v65_v55 }
  0x1a   :  { %255 = vmatpush.msra.mxu1 %v254_v38  ;;  %94 = vmatpush.msra.mxu0 %v1104_v11  ;;  %v1683_v1 = vand.u32 4294901760, %v1183_v53  ;;  %v1207_v6 = vsub.f32 %v67_v42, %v1180_v52  ;;  %v295_v7 = vsub.f32 %v1172_v46, %v1684_v54  ;;  %v1214_v8 = vsub.f32 %v55_v47, %v1187_v56 }
  0x1b   :  { %947 = vmatpush.msra.mxu2 %v1117_v18  ;;  %959 = vmatpush.msra.mxu3 %v260_v43  ;;  %v284_v13 = vand.u32 4294901760, %v283_v58  ;;  %v1217_v17 = vand.u32 4294901760, %v64_v62  ;;  %v1680_v25 = vand.u32 4294901760, %v1196_v60  ;;  %v1221_v29 = vsub.f32 %v66_v49, %v1193_v59 }
  0x1c   :  { %261 = vmatpush.msra.mxu1 %v260_v43  ;;  %96 = vmatpush.msra.mxu0 %v1117_v18  ;;  %v290_v31 = vand.u32 4294901760, %v289_v61  ;;  %v1223_v33 = vand.u32 4294901760, %v63_v2  ;;  %v301_v34 = vsub.f32 %v1183_v53, %v1683_v1  ;;  %v1681_v37 = vand.u32 4294901760, %v1207_v6 }
  0x1d   :  { %948 = vmatpush.msra.mxu2 %v1129_v24  ;;  %960 = vmatpush.msra.mxu3 %v266_v50  ;;  %v1232_v38 = vsub.f32 %v65_v55, %v1203_v0  ;;  %v1234_v42 = vand.u32 4294901760, %v47_v12  ;;  %v296_v43 = vand.u32 4294901760, %v295_v7  ;;  %v1682_v44 = vand.u32 4294901760, %v1214_v8 }
  0x1e   :  { %267 = vmatpush.msra.mxu1 %v266_v50  ;;  %98 = vmatpush.msra.mxu0 %v1129_v24  ;;  %v1238_v47 = vand.u32 4294901760, %v56_v30  ;;  %v307_v49 = vsub.f32 %v1196_v60, %v1680_v25  ;;  %v1685_v50 = vand.u32 4294901760, %v1221_v29  ;;  %v1246_v51 = vsub.f32 %v64_v62, %v1217_v17 }
  0x1f   :  { %949 = vmatpush.msra.mxu2 %v1133_v27  ;;  %961 = vmatpush.msra.mxu3 %v272_v57  ;;  %v1249_v55 = vsub.f32 %v47_v12, %v1234_v42  ;;  %v302_v58 = vand.u32 4294901760, %v301_v34  ;;  %v313_v61 = vsub.f32 %v1207_v6, %v1681_v37  ;;  %v1258_v62 = vsub.f32 %v63_v2, %v1223_v33  ;;  %v57_v34 = vld [vmem:[#allocation2 + $0x50] sm:$0xff] }
  0x20   :  { %273 = vmatpush.msra.mxu1 %v272_v57  ;;  %100 = vmatpush.msra.mxu0 %v1133_v27  ;;  %v48_v57 = vld [vmem:[#allocation2 + $0x8] sm:$0xff]  ;;  %v182_v7 = vsub.f32 %v1214_v8, %v1682_v44  ;;  %v1265_v12 = vsub.f32 %v56_v30, %v1238_v47  ;;  %v308_v2 = vand.u32 4294901760, %v307_v49  ;;  %v319_v37 = vsub.f32 %v1221_v29, %v1685_v50 }
  0x21   :  { %950 = vmatpush.msra.mxu2 %v1153_v35  ;;  %962 = vmatpush.msra.mxu3 %v278_v63  ;;  %v1268_v25 = vand.u32 4294901760, %v48_v57  ;;  %v314_v30 = vand.u32 4294901760, %v313_v61  ;;  %v336_v1 = vand.u32 4294901760, %v1258_v62  ;;  %v1281_v49 = vand.u32 4294901760, %v57_v34 }
  0x22   :  { %279 = vmatpush.msra.mxu1 %v278_v63  ;;  %102 = vmatpush.msra.mxu0 %v1153_v35  ;;  %v1686_v63 = vand.u32 4294901760, %v1232_v38  ;;  %v183_v54 = vand.u32 4294901760, %v182_v7  ;;  %v1692_v50 = vand.u32 4294901760, %v1265_v12 }
  0x23   :  { %951 = vmatpush.msra.mxu2 %v1164_v41  ;;  %963 = vmatpush.msra.mxu3 %v284_v13  ;;  %v1289_v61 = vsub.f32 %v48_v57, %v1268_v25  ;;  %v337_v57 = vsub.f32 %v1258_v62, %v336_v1 }
  0x24   :  { %285 = vmatpush.msra.mxu1 %v284_v13  ;;  %104 = vmatpush.msra.mxu0 %v1164_v41  ;;  %v1688_v13 = vand.u32 4294901760, %v1249_v55  ;;  %v325_v44 = vsub.f32 %v1232_v38, %v1686_v63  ;;  %v320_v63 = vand.u32 4294901760, %v319_v37  ;;  %v190_v37 = vsub.f32 %v1265_v12, %v1692_v50 }
  0x25   :  { %952 = vmatpush.msra.mxu2 %v1180_v52  ;;  %964 = vmatpush.msra.mxu3 %v290_v31 }
  0x26   :  { %291 = vmatpush.msra.mxu1 %v290_v31  ;;  %106 = vmatpush.msra.mxu0 %v1180_v52  ;;  %v1689_v31 = vand.u32 4294901760, %v1246_v51  ;;  %v326_v48 = vand.u32 4294901760, %v325_v44 }
  0x27   :  { %953 = vmatpush.msra.mxu2 %v1193_v59  ;;  %965 = vmatpush.msra.mxu3 %v296_v43 }
  0x28   :  { %297 = vmatpush.msra.mxu1 %v296_v43  ;;  %108 = vmatpush.msra.mxu0 %v1193_v59  ;;  %v118_v43 = vsub.f32 %v1249_v55, %v1688_v13  ;;  %v331_v7 = vsub.f32 %v1246_v51, %v1689_v31  ;;  %v1301_v13 = vsub.f32 %v57_v34, %v1281_v49  ;;  %v125_v31 = vand.u32 4294901760, %v1289_v61 }
  0x29   :  { %954 = vmatpush.msra.mxu2 %v1203_v0  ;;  %966 = vmatpush.msra.mxu3 %v302_v58  ;;  %v1312_v34 = vand.u32 4294901760, %v58_v45 }
  0x2a   :  { %303 = vmatpush.msra.mxu1 %v302_v58  ;;  %110 = vmatpush.msra.mxu0 %v1203_v0  ;;  %v49_v58 = vld [vmem:[#allocation2 + $0x10] sm:$0xff]  ;;  %v332_v44 = vand.u32 4294901760, %v331_v7  ;;  %v126_v7 = vsub.f32 %v1289_v61, %v125_v31 }
  0x2b   :  { %955 = vmatpush.msra.mxu2 %v1217_v17  ;;  %967 = vmatpush.msra.mxu3 %v308_v2  ;;  %v1307_v39 = vand.u32 4294901760, %v49_v58 }
  0x2c   :  { %309 = vmatpush.msra.mxu1 %v308_v2  ;;  %112 = vmatpush.msra.mxu0 %v1217_v17  ;;  %v119_v2 = vand.u32 4294901760, %v118_v43  ;;  %v197_v43 = vand.u32 4294901760, %v1301_v13 }
  0x2d   :  { %956 = vmatpush.msra.mxu2 %v1223_v33  ;;  %968 = vmatpush.msra.mxu3 %v314_v30  ;;  %v1319_v50 = vsub.f32 %v49_v58, %v1307_v39 }
  0x2e   :  { %184 = vmatmul.f32.vlgmr.msra.gmra.mxu2 %v183_v54  ;;  %315 = vmatpush.msra.mxu1 %v314_v30  ;;  %v338_v54 = vand.u32 4294901760, %v337_v57  ;;  %v191_v30 = vand.u32 4294901760, %v190_v37  ;;  %v198_v58 = vsub.f32 %v1301_v13, %v197_v43  ;;  %v127_v57 = vand.u32 4294901760, %v126_v7 }
  0x2f   :  { %969 = vmatpush.msra.mxu3 %v320_v63  ;;  %407 = vmatpush.msrb.mxu2 %v1108_v14  ;;  %v133_v37 = vand.u32 4294901760, %v1319_v50 }
  0x30   :  { %321 = vmatpush.msra.mxu1 %v320_v63  ;;  %114 = vmatpush.msra.mxu0 %v1223_v33  ;;  %v50_v63 = vld [vmem:[#allocation2 + $0x18] sm:$0xff] }
  0x31   :  { %970 = vmatpush.msra.mxu3 %v326_v48  ;;  %410 = vmatpush.msrb.mxu2 %v1111_v15 }
  0x32   :  { %327 = vmatpush.msra.mxu1 %v326_v48  ;;  %120 = vmatmul.f32.vlgmr.msra.gmra.mxu0 %v119_v2  ;;  %v1326_v48 = vsub.f32 %v58_v45, %v1312_v34  ;;  %v59_v2 = vld [vmem:[#allocation2 + $0x60] sm:$0xff] }
  0x33   :  { %971 = vmatpush.msra.mxu3 %v332_v44  ;;  %413 = vmatpush.msrb.mxu2 %v1114_v16  ;;  %v1341_v14 = vand.u32 4294901760, %v59_v2 }
  0x34   :  { %333 = vmatpush.msra.mxu1 %v332_v44  ;;  %666 = vmatpush.msrb.mxu0 %v246_v21  ;;  %v1333_v44 = vand.u32 4294901760, %v50_v63  ;;  %v199_v21 = vand.u32 4294901760, %v198_v58  ;;  %v205_v45 = vand.u32 4294901760, %v1326_v48 }
  0x35   :  { %972 = vmatpush.msra.mxu3 %v338_v54  ;;  %416 = vmatpush.msrb.mxu2 %v1120_v19  ;;  %v1359_v15 = vsub.f32 %v59_v2, %v1341_v14  ;;  %v1693_v2 = vand.u32 4294901760, %v1136_v28 }
  0x36   :  { %192 = vmatmul.f32.gmra.mxu2 %v191_v30  ;;  %373 = vmatmul.f32.vlgmr.msra.gmra.mxu3 %v1187_v56  ;;  %v1349_v30 = vsub.f32 %v50_v63, %v1333_v44 }
  0x37   :  { %535 = vmatpush.msrb.mxu3 %v1094_v3  ;;  %339 = vmatpush.msra.mxu1 %v338_v54  ;;  %v134_v54 = vsub.f32 %v1319_v50, %v133_v37  ;;  %v213_v7 = vand.u32 4294901760, %v1359_v15 }
  0x38   :  { %341 = vmatmul.f32.vlgmr.msra.gmra.mxu1 %v1234_v42  ;;  %670 = vmatpush.msrb.mxu0 %v252_v22  ;;  %v141_v16 = vand.u32 4294901760, %v1349_v30 }
  0x39   :  { %537 = vmatpush.msrb.mxu3 %v1096_v4  ;;  %793 = vmatpush.msrb.mxu1 %v1094_v3  ;;  %v51_v3 = vld [vmem:[#allocation2 + $0x20] sm:$0xff]  ;;  %v135_v22 = vand.u32 4294901760, %v134_v54 }
  0x3a   :  { %419 = vmatpush.msrb.mxu2 %v1123_v20  ;;  %128 = vmatmul.f32.gmra.mxu0 %v127_v57  ;;  %v142_v19 = vsub.f32 %v1349_v30, %v141_v16  ;;  %v214_v57 = vsub.f32 %v1359_v15, %v213_v7 }
  0x3b   :  { %539 = vmatpush.msrb.mxu3 %v1098_v5  ;;  %795 = vmatpush.msrb.mxu1 %v1096_v4  ;;  %v206_v4 = vsub.f32 %v1326_v48, %v205_v45 }
  0x3c   :  { %674 = vmatpush.msrb.mxu0 %v258_v23  ;;  %422 = vmatpush.msrb.mxu2 %v1136_v28  ;;  %v1366_v23 = vand.u32 4294901760, %v51_v3  ;;  %v1694_v28 = vand.u32 4294901760, %v1156_v36 }
  0x3d   :  { %541 = vmatpush.msrb.mxu3 %v1100_v9  ;;  %797 = vmatpush.msrb.mxu1 %v1098_v5  ;;  %v60_v5 = vld [vmem:[#allocation2 + $0x68] sm:$0xff]  ;;  %v207_v63 = vand.u32 4294901760, %v206_v4  ;;  %v215_v4 = vand.u32 4294901760, %v214_v57 }
  0x3e   :  { %200 = vmatmul.f32.gmra.mxu2 %v199_v21  ;;  %377 = vmatmul.f32.gmra.mxu3 %v1238_v47  ;;  %v1383_v58 = vsub.f32 %v51_v3, %v1366_v23  ;;  %v143_v21 = vand.u32 4294901760, %v142_v19  ;;  %v1696_v19 = vand.u32 4294901760, %v1172_v46 }
  0x3f   :  { %543 = vmatpush.msrb.mxu3 %v1102_v10  ;;  %678 = vmatpush.msrb.mxu0 %v264_v26  ;;  %v1380_v26 = vand.u32 4294901760, %v60_v5 }
  0x40   :  { %345 = vmatmul.f32.gmra.mxu1 %v1268_v25  ;;  %425 = vmatpush.msrb.mxu2 %v1156_v36  ;;  %v1695_v36 = vand.u32 4294901760, %v1162_v40 }
  0x41   :  { %545 = vmatpush.msrb.mxu3 %v1104_v11  ;;  %799 = vmatpush.msrb.mxu1 %v1100_v9  ;;  %v52_v9 = vld [vmem:[#allocation2 + $0x28] sm:$0xff]  ;;  %v1398_v20 = vsub.f32 %v60_v5, %v1380_v26 }
  0x42   :  { %136 = vmatmul.f32.gmra.mxu0 %v135_v22  ;;  %428 = vmatpush.msrb.mxu2 %v1162_v40  ;;  %v1401_v54 = vand.u32 4294901760, %v52_v9 }
  0x43   :  { %547 = vmatpush.msrb.mxu3 %v1117_v18  ;;  %682 = vmatpush.msrb.mxu0 %v270_v32  ;;  %v61_v32 = vld [vmem:[#allocation2 + $0x70] sm:$0xff]  ;;  %v221_v22 = vand.u32 4294901760, %v1398_v20 }
  0x44   :  { %801 = vmatpush.msrb.mxu1 %v1102_v10  ;;  %431 = vmatpush.msrb.mxu2 %v1172_v46  ;;  %v149_v10 = vand.u32 4294901760, %v1383_v58  ;;  %v1410_v3 = vand.u32 4294901760, %v61_v32  ;;  %v1418_v5 = vsub.f32 %v52_v9, %v1401_v54  ;;  %v62_v46 = vld [vmem:[#allocation2 + $0x78] sm:$0xff] }
  0x45   :  { %549 = vmatpush.msrb.mxu3 %v1129_v24  ;;  %686 = vmatpush.msrb.mxu0 %v1693_v2  ;;  %v222_v40 = vsub.f32 %v1398_v20, %v221_v22  ;;  %v1697_v2 = vand.u32 4294901760, %v1183_v53 }
  0x46   :  { %208 = vmatmul.f32.gmra.mxu2 %v207_v63  ;;  %381 = vmatmul.f32.gmra.mxu3 %v1281_v49  ;;  %v1426_v63 = vsub.f32 %v61_v32, %v1410_v3 }
  0x47   :  { %803 = vmatpush.msrb.mxu1 %v1104_v11  ;;  %551 = vmatpush.msrb.mxu3 %v1133_v27  ;;  %v150_v11 = vsub.f32 %v1383_v58, %v149_v10  ;;  %v223_v32 = vand.u32 4294901760, %v222_v40 }
  0x48   :  { %349 = vmatmul.f32.gmra.mxu1 %v1307_v39  ;;  %690 = vmatpush.msrb.mxu0 %v1694_v28  ;;  %v1449_v28 = vand.u32 4294901760, %v62_v46 }
  0x49   :  { %434 = vmatpush.msrb.mxu2 %v1183_v53  ;;  %805 = vmatpush.msrb.mxu1 %v1117_v18  ;;  %v53_v18 = vld [vmem:[#allocation2 + $0x30] sm:$0xff]  ;;  %v151_v9 = vand.u32 4294901760, %v150_v11  ;;  %v1698_v53 = vand.u32 4294901760, %v1196_v60  ;;  %v54_v11 = vld [vmem:[#allocation2 + $0x38] sm:$0xff] }
  0x4a   :  { %144 = vmatmul.f32.gmra.mxu0 %v143_v21  ;;  %553 = vmatpush.msrb.mxu3 %v1153_v35  ;;  %v1436_v57 = vand.u32 4294901760, %v53_v18  ;;  %v229_v21 = vand.u32 4294901760, %v1426_v63 }
  0x4b   :  { %694 = vmatpush.msrb.mxu0 %v1695_v36  ;;  %437 = vmatpush.msrb.mxu2 %v1196_v60  ;;  %v1699_v36 = vand.u32 4294901760, %v1207_v6 }
  0x4c   :  { %807 = vmatpush.msrb.mxu1 %v1129_v24  ;;  %555 = vmatpush.msrb.mxu3 %v1164_v41  ;;  %v157_v24 = vand.u32 4294901760, %v1418_v5 }
  0x4d   :  { %698 = vmatpush.msrb.mxu0 %v1696_v19  ;;  %440 = vmatpush.msrb.mxu2 %v1207_v6  ;;  %v1471_v19 = vand.u32 4294901760, %v54_v11  ;;  %v1700_v6 = vand.u32 4294901760, %v1221_v29 }
  0x4e   :  { %216 = vmatmul.f32.gmra.mxu2 %v215_v4  ;;  %385 = vmatmul.f32.gmra.mxu3 %v1312_v34  ;;  %v1453_v4 = vsub.f32 %v53_v18, %v1436_v57  ;;  %v1468_v18 = vsub.f32 %v62_v46, %v1449_v28 }
  0x4f   :  { %809 = vmatpush.msrb.mxu1 %v1133_v27  ;;  %557 = vmatpush.msrb.mxu3 %v1180_v52  ;;  %v158_v27 = vsub.f32 %v1418_v5, %v157_v24 }
  0x50   :  { %353 = vmatmul.f32.gmra.mxu1 %v1333_v44  ;;  %702 = vmatpush.msrb.mxu0 %v1697_v2  ;;  %v1701_v2 = vand.u32 4294901760, %v1232_v38 }
  0x51   :  { %443 = vmatpush.msrb.mxu2 %v1221_v29  ;;  %811 = vmatpush.msrb.mxu1 %v1153_v35  ;;  %v230_v35 = vsub.f32 %v1426_v63, %v229_v21  ;;  %v159_v60 = vand.u32 4294901760, %v158_v27  ;;  %v1702_v29 = vand.u32 4294901760, %v1246_v51 }
  0x52   :  { %152 = vmatmul.f32.gmra.mxu0 %v151_v9  ;;  %559 = vmatpush.msrb.mxu3 %v1193_v59  ;;  %v237_v9 = vand.u32 4294901760, %v1468_v18 }
  0x53   :  { %706 = vmatpush.msrb.mxu0 %v1698_v53  ;;  %446 = vmatpush.msrb.mxu2 %v1232_v38  ;;  %v231_v40 = vand.u32 4294901760, %v230_v35 }
  0x54   :  { %813 = vmatpush.msrb.mxu1 %v1164_v41  ;;  %561 = vmatpush.msrb.mxu3 %v1203_v0  ;;  %v165_v41 = vand.u32 4294901760, %v1453_v4 }
  0x55   :  { %710 = vmatpush.msrb.mxu0 %v1699_v36  ;;  %449 = vmatpush.msrb.mxu2 %v1246_v51  ;;  %v1704_v51 = vand.u32 4294901760, %v1214_v8 }
  0x56   :  { %224 = vmatmul.f32.gmra.mxu2 %v223_v32  ;;  %389 = vmatmul.f32.gmra.mxu3 %v1341_v14  ;;  %v166_v46 = vsub.f32 %v1453_v4, %v165_v41 }
  0x57   :  { %815 = vmatpush.msrb.mxu1 %v1180_v52  ;;  %452 = vmatpush.msrb.mxu2 %v1258_v62  ;;  %v172_v52 = vsub.f32 %v54_v11, %v1471_v19 }
  0x58   :  { %357 = vmatmul.f32.gmra.mxu1 %v1366_v23  ;;  %563 = vmatpush.msrb.mxu3 %v1217_v17  ;;  %v167_v32 = vand.u32 4294901760, %v166_v46 }
  0x59   :  { %714 = vmatpush.msrb.mxu0 %v1700_v6  ;;  %817 = vmatpush.msrb.mxu1 %v1193_v59  ;;  %v238_v59 = vsub.f32 %v1468_v18, %v237_v9  ;;  %v173_v27 = vand.u32 4294901760, %v172_v52 }
  0x5a   :  { %160 = vmatmul.f32.gmra.mxu0 %v159_v60  ;;  %565 = vmatpush.msrb.mxu3 %v1223_v33 }
  0x5b   :  { %718 = vmatpush.msrb.mxu0 %v1701_v2  ;;  %819 = vmatpush.msrb.mxu1 %v1203_v0  ;;  %v239_v0 = vand.u32 4294901760, %v238_v59  ;;  %v174_v38 = vsub.f32 %v172_v52, %v173_v27 }
  0x5d   :  { %722 = vmatpush.msrb.mxu0 %v1702_v29  ;;  %821 = vmatpush.msrb.mxu1 %v1217_v17  ;;  %v175_v17 = vand.u32 4294901760, %v174_v38 }
  0x5e   :  { %232 = vmatmul.f32.gmra.mxu2 %v231_v40  ;;  %393 = vmatmul.f32.gmra.mxu3 %v1380_v26 }
  0x5f   :  { %726 = vmatpush.msrb.mxu0 %v336_v1  ;;  %823 = vmatpush.msrb.mxu1 %v1223_v33  ;;  %v1703_v1 = vand.u32 4294901760, %v1249_v55 }
  0x60   :  { %361 = vmatmul.f32.gmra.mxu1 %v1401_v54 }
  0x62   :  { %168 = vmatmul.f32.gmra.mxu0 %v167_v32 }
  0x66   :  { %240 = vmatmul.f32.gmra.mxu2 %v239_v0  ;;  %397 = vmatmul.f32.gmra.mxu3 %v1410_v3 }
  0x68   :  { %365 = vmatmul.f32.gmra.mxu1 %v1436_v57 }
  0x6a   :  { %176 = vmatmul.f32.gmra.mxu0 %v175_v17 }
  0x6e   :  { %401 = vmatmul.f32.gmra.mxu3 %v1449_v28  ;;  %455 = vmatmul.f32.vlgmr.msrb.gmra.mxu2 %v1249_v55 }
  0x70   :  { %369 = vmatmul.f32.gmra.mxu1 %v1471_v19 }
  0x72   :  { %728 = vmatmul.f32.vlgmr.msrb.gmra.mxu0 %v1234_v42 }
  0x76   :  { %460 = vmatmul.f32.gmra.mxu2 %v1289_v61  ;;  %569 = vmatmul.f32.vlgmr.msrb.gmra.mxu3 %v1703_v1 }
  0x78   :  { %825 = vmatmul.f32.vlgmr.msrb.gmra.mxu1 %v1234_v42 }
  0x7a   :  { %732 = vmatmul.f32.gmra.mxu0 %v1268_v25 }
  0x7e   :  { %465 = vmatmul.f32.gmra.mxu2 %v1319_v50  ;;  %575 = vmatmul.f32.gmra.mxu3 %v125_v31 }
  0x80   :  { %829 = vmatmul.f32.gmra.mxu1 %v1268_v25 }
  0x82   :  { %736 = vmatmul.f32.gmra.mxu0 %v1307_v39 }
  0x86   :  { %470 = vmatmul.f32.gmra.mxu2 %v1349_v30  ;;  %581 = vmatmul.f32.gmra.mxu3 %v133_v37  ;;  %v1705_v30 = vand.u32 4294901760, %v1265_v12 }
  0x88   :  { %833 = vmatmul.f32.gmra.mxu1 %v1307_v39  ;;  %v1540_v39 = vld [vmem:[%s1678_s2] ss:$0 sm:$0xff]  ;;  %s1061_s2 = smov [#allocation7]  }
  0x89   :  { %s925_s24 = sshll.u32 %s1061_s2, 4  ;;  %s926_s24 = int_to_ptr.vmem [resolvable:$true] %s925_s24 }
  0x8a   :  { %740 = vmatmul.f32.gmra.mxu0 %v1333_v44 }
  0x8e   :  { %475 = vmatmul.f32.gmra.mxu2 %v1383_v58  ;;  %587 = vmatmul.f32.gmra.mxu3 %v141_v16 }
  0x90   :  { %837 = vmatmul.f32.gmra.mxu1 %v1333_v44 }
  0x92   :  { %744 = vmatmul.f32.gmra.mxu0 %v1366_v23 }
  0x96   :  { %480 = vmatmul.f32.gmra.mxu2 %v1418_v5  ;;  %593 = vmatmul.f32.gmra.mxu3 %v149_v10 }
  0x98   :  { %841 = vmatmul.f32.gmra.mxu1 %v1366_v23 }
  0x9a   :  { %748 = vmatmul.f32.gmra.mxu0 %v1401_v54 }
  0x9e   :  { %485 = vmatmul.f32.gmra.mxu2 %v1453_v4  ;;  %599 = vmatmul.f32.gmra.mxu3 %v157_v24 }
  0xa0   :  { %845 = vmatmul.f32.gmra.mxu1 %v1401_v54 }
  0xa2   :  { %752 = vmatmul.f32.gmra.mxu0 %v1436_v57 }
  0xa6   :  { %490 = vmatmul.f32.gmra.mxu2 %v172_v52  ;;  %605 = vmatmul.f32.gmra.mxu3 %v165_v41 }
  0xa8   :  { %849 = vmatmul.f32.gmra.mxu1 %v1436_v57 }
  0xaa   :  { %756 = vmatmul.f32.gmra.mxu0 %v1471_v19 }
  0xae   :  { %495 = vmatmul.f32.gmra.mxu2 %v1214_v8  ;;  %611 = vmatmul.f32.gmra.mxu3 %v173_v27 }
  0xaf   :  { %v1542_v25 = vpop.f32.mrf.mxu0 }
  0xb0   :  { %853 = vmatmul.f32.gmra.mxu1 %v1471_v19 }
  0xb1   :  { %v185_v33 = vpop.f32.mrf.mxu2 }
  0xb2   :  { %v186_v42 = vadd.f32 %v1540_v39, %v185_v33  ;;  %760 = vmatmul.f32.gmra.mxu0 %v1187_v56 }
  0xb5   :  { %v1547_v50 = vpop.f32.mrf.mxu1 }
  0xb6   :  { %500 = vmatmul.f32.gmra.mxu2 %v1265_v12  ;;  %617 = vmatmul.f32.gmra.mxu3 %v1704_v51 }
  0xb7   :  { %v1552_v55 = vpop.f32.mrf.mxu0 }
  0xb8   :  { %857 = vmatmul.f32.gmra.mxu1 %v1187_v56 }
  0xb9   :  { %v193_v62 = vpop.f32.mrf.mxu2  ;;  %v374_v31 = vpop.f32.mrf.mxu3 }
  0xba   :  { %v194_v61 = vadd.f32 %v1540_v39, %v193_v62  ;;  %v1556_v37 = vadd.f32 %v374_v31, %v186_v42  ;;  %764 = vmatmul.f32.gmra.mxu0 %v1238_v47 }
  0xbd   :  { %v1559_v44 = vpop.f32.mrf.mxu1 }
  0xbe   :  { %505 = vmatmul.f32.gmra.mxu2 %v1301_v13  ;;  %623 = vmatmul.f32.gmra.mxu3 %v1705_v30 }
  0xbf   :  { %v1564_v8 = vpop.f32.mrf.mxu0 }
  0xc0   :  { %861 = vmatmul.f32.gmra.mxu1 %v1238_v47 }
  0xc1   :  { %v201_v56 = vpop.f32.mrf.mxu2  ;;  %v378_v16 = vpop.f32.mrf.mxu3 }
  0xc2   :  { %v202_v23 = vadd.f32 %v1540_v39, %v201_v56  ;;  %v1568_v58 = vadd.f32 %v378_v16, %v194_v61  ;;  %768 = vmatmul.f32.gmra.mxu0 %v1281_v49 }
  0xc5   :  { %v1571_v10 = vpop.f32.mrf.mxu1 }
  0xc6   :  { %510 = vmatmul.f32.gmra.mxu2 %v1326_v48  ;;  %629 = vmatmul.f32.gmra.mxu3 %v197_v43 }
  0xc7   :  { %v1576_v12 = vpop.f32.mrf.mxu0 }
  0xc8   :  { %865 = vmatmul.f32.gmra.mxu1 %v1281_v49 }
  0xc9   :  { %v209_v47 = vpop.f32.mrf.mxu2  ;;  %v382_v54 = vpop.f32.mrf.mxu3 }
  0xca   :  { %v210_v5 = vadd.f32 %v1540_v39, %v209_v47  ;;  %v1580_v24 = vadd.f32 %v382_v54, %v202_v23  ;;  %772 = vmatmul.f32.gmra.mxu0 %v1312_v34 }
  0xcd   :  { %v1583_v57 = vpop.f32.mrf.mxu1 }
  0xce   :  { %515 = vmatmul.f32.gmra.mxu2 %v1359_v15  ;;  %635 = vmatmul.f32.gmra.mxu3 %v205_v45 }
  0xcf   :  { %v1588_v13 = vpop.f32.mrf.mxu0 }
  0xd0   :  { %869 = vmatmul.f32.gmra.mxu1 %v1312_v34 }
  0xd1   :  { %v217_v49 = vpop.f32.mrf.mxu2  ;;  %v386_v43 = vpop.f32.mrf.mxu3 }
  0xd2   :  { %v218_v4 = vadd.f32 %v1540_v39, %v217_v49  ;;  %v1592_v53 = vadd.f32 %v386_v43, %v210_v5  ;;  %776 = vmatmul.f32.gmra.mxu0 %v1341_v14  ;;  %v146_v43 = vadd.f32 %v1540_v39, %v1576_v12 }
  0xd5   :  { %v1595_v11 = vpop.f32.mrf.mxu1 }
  0xd6   :  { %520 = vmatmul.f32.gmra.mxu2 %v1398_v20  ;;  %641 = vmatmul.f32.gmra.mxu3 %v213_v7 }
  0xd7   :  { %v1600_v48 = vpop.f32.mrf.mxu0 }
  0xd8   :  { %873 = vmatmul.f32.gmra.mxu1 %v1341_v14 }
  0xd9   :  { %v225_v34 = vpop.f32.mrf.mxu2  ;;  %v390_v45 = vpop.f32.mrf.mxu3 }
  0xda   :  { %v226_v35 = vadd.f32 %v1540_v39, %v225_v34  ;;  %v1604_v36 = vadd.f32 %v390_v45, %v218_v4  ;;  %780 = vmatmul.f32.gmra.mxu0 %v1380_v26 }
  0xdd   :  { %v1607_v60 = vpop.f32.mrf.mxu1 }
  0xde   :  { %525 = vmatmul.f32.gmra.mxu2 %v1426_v63  ;;  %647 = vmatmul.f32.gmra.mxu3 %v221_v22 }
  0xdf   :  { %v1612_v15 = vpop.f32.mrf.mxu0 }
  0xe0   :  { %877 = vmatmul.f32.gmra.mxu1 %v1380_v26 }
  0xe1   :  { %v233_v14 = vpop.f32.mrf.mxu2  ;;  %v394_v7 = vpop.f32.mrf.mxu3 }
  0xe2   :  { %v234_v41 = vadd.f32 %v1540_v39, %v233_v14  ;;  %v1616_v19 = vadd.f32 %v394_v7, %v226_v35  ;;  %784 = vmatmul.f32.gmra.mxu0 %v1410_v3 }
  0xe5   :  { %v1619_v6 = vpop.f32.mrf.mxu1 }
  0xe6   :  { %530 = vmatmul.f32.gmra.mxu2 %v1468_v18  ;;  %653 = vmatmul.f32.gmra.mxu3 %v229_v21  ;;  %v130_v18 = vadd.f32 %v1540_v39, %v1552_v55 }
  0xe7   :  { %v1624_v20 = vpop.f32.mrf.mxu0 }
  0xe8   :  { %881 = vmatmul.f32.gmra.mxu1 %v1410_v3  ;;  %v122_v3 = vadd.f32 %v1540_v39, %v1542_v25  ;;  %v347_v33 = vadd.f32 %v1559_v44, %v130_v18 }
  0xe9   :  { %v241_v26 = vpop.f32.mrf.mxu2  ;;  %v398_v22 = vpop.f32.mrf.mxu3 }
  0xea   :  { %v242_v40 = vadd.f32 %v1540_v39, %v241_v26  ;;  %v1628_v46 = vadd.f32 %v398_v22, %v234_v41  ;;  %788 = vmatmul.f32.gmra.mxu0 %v1449_v28  ;;  %v343_v32 = vadd.f32 %v1547_v50, %v122_v3  ;;  %v138_v50 = vadd.f32 %v1540_v39, %v1564_v8 }
  0xeb   :  { %v355_v8 = vadd.f32 %v1583_v57, %v146_v43  ;;  %v154_v22 = vadd.f32 %v1540_v39, %v1588_v13 }
  0xec   :  { %v351_v55 = vadd.f32 %v1571_v10, %v138_v50 }
  0xed   :  { %v1631_v52 = vpop.f32.mrf.mxu1  ;;  %v359_v12 = vadd.f32 %v1595_v11, %v154_v22 }
  0xee   :  { %659 = vmatmul.f32.gmra.mxu3 %v237_v9 }
  0xef   :  { %v729_v2 = vpop.f32.mrf.mxu0 }
  0xf0   :  { %885 = vmatmul.f32.gmra.mxu1 %v1449_v28 }
  0xf1   :  { %v402_v63 = vpop.f32.mrf.mxu3  ;;  %v456_v21 = vpop.f32.mrf.mxu2 }
  0xf2   :  { %v1638_v29 = vadd.f32 %v402_v63, %v242_v40  ;;  %v457_v0 = vadd.f32 %v456_v21, %v343_v32 }
  0xf5   :  { %v826_v59 = vpop.f32.mrf.mxu1 }
  0xf7   :  { %v733_v27 = vpop.f32.mrf.mxu0 }
  0xf9   :  { %v461_v38 = vpop.f32.mrf.mxu2  ;;  %v570_v17 = vpop.f32.mrf.mxu3 }
  0xfa   :  { %v571_v9 = vadd.f32 %v570_v17, %v457_v0  ;;  %v462_v25 = vadd.f32 %v461_v38, %v347_v33  ;;  %v162_v0 = vadd.f32 %v1540_v39, %v1600_v48 }
  0xfc   :  { %v730_v1 = vadd.f32 %v729_v2, %v571_v9  ;;  %v363_v13 = vadd.f32 %v1607_v60, %v162_v0 }
  0xfd   :  { %v830_v28 = vpop.f32.mrf.mxu1 }
  0xfe   :  { %v827_v42 = vadd.f32 %v826_v59, %v730_v1 }
  0xff   :  { %v737_v51 = vpop.f32.mrf.mxu0 }
 0x100   :  { %v889_v62 = vmax.f32 %v827_v42, 0.0 }
 0x101   :  { %v466_v31 = vpop.f32.mrf.mxu2  ;;  %v576_v61 = vpop.f32.mrf.mxu3 }
 0x102   :  { %905 = vst [vmem:[#allocation7] sm:$0xff] %v889_v62  ;;  %v577_v30 = vadd.f32 %v576_v61, %v462_v25  ;;  %v467_v54 = vadd.f32 %v466_v31, %v351_v55  ;;  %v178_v55 = vadd.f32 %v1540_v39, %v1624_v20 }
 0x104   :  { %v734_v56 = vadd.f32 %v733_v27, %v577_v30 }
 0x105   :  { %v834_v16 = vpop.f32.mrf.mxu1 }
 0x106   :  { %v831_v23 = vadd.f32 %v830_v28, %v734_v56 }
 0x107   :  { %v741_v47 = vpop.f32.mrf.mxu0 }
 0x108   :  { %v890_v5 = vmax.f32 %v831_v23, 0.0 }
 0x109   :  { %v471_v44 = vpop.f32.mrf.mxu2  ;;  %v582_v49 = vpop.f32.mrf.mxu3 }
 0x10a   :  { %906 = vst [vmem:[#allocation7 + $0x8] sm:$0xff] %v890_v5  ;;  %v583_v4 = vadd.f32 %v582_v49, %v467_v54  ;;  %v472_v7 = vadd.f32 %v471_v44, %v355_v8 }
 0x10c   :  { %v738_v34 = vadd.f32 %v737_v51, %v583_v4  ;;  %v170_v51 = vadd.f32 %v1540_v39, %v1612_v15  ;;  %v371_v15 = vadd.f32 %v1631_v52, %v178_v55 }
 0x10d   :  { %v838_v45 = vpop.f32.mrf.mxu1 }
 0x10e   :  { %v835_v35 = vadd.f32 %v834_v16, %v738_v34  ;;  %v367_v48 = vadd.f32 %v1619_v6, %v170_v51 }
 0x10f   :  { %v745_v14 = vpop.f32.mrf.mxu0 }
 0x110   :  { %v891_v41 = vmax.f32 %v835_v35, 0.0 }
 0x111   :  { %v476_v10 = vpop.f32.mrf.mxu2  ;;  %v588_v26 = vpop.f32.mrf.mxu3 }
 0x112   :  { %907 = vst [vmem:[#allocation7 + $0x10] sm:$0xff] %v891_v41  ;;  %v589_v40 = vadd.f32 %v588_v26, %v472_v7  ;;  %v477_v59 = vadd.f32 %v476_v10, %v359_v12 }
 0x114   :  { %v742_v2 = vadd.f32 %v741_v47, %v589_v40 }
 0x115   :  { %v842_v63 = vpop.f32.mrf.mxu1 }
 0x116   :  { %v839_v21 = vadd.f32 %v838_v45, %v742_v2 }
 0x117   :  { %v749_v3 = vpop.f32.mrf.mxu0 }
 0x118   :  { %v892_v32 = vmax.f32 %v839_v21, 0.0 }
 0x119   :  { %v481_v57 = vpop.f32.mrf.mxu2  ;;  %v594_v27 = vpop.f32.mrf.mxu3 }
 0x11a   :  { %908 = vst [vmem:[#allocation7 + $0x18] sm:$0xff] %v892_v32  ;;  %v595_v38 = vadd.f32 %v594_v27, %v477_v59  ;;  %v482_v28 = vadd.f32 %v481_v57, %v363_v13 }
 0x11c   :  { %v746_v17 = vadd.f32 %v745_v14, %v595_v38 }
 0x11d   :  { %v846_v18 = vpop.f32.mrf.mxu1 }
 0x11e   :  { %v843_v9 = vadd.f32 %v842_v63, %v746_v17 }
 0x11f   :  { %v753_v1 = vpop.f32.mrf.mxu0 }
 0x120   :  { %v893_v33 = vmax.f32 %v843_v9, 0.0 }
 0x121   :  { %v486_v11 = vpop.f32.mrf.mxu2  ;;  %v600_v42 = vpop.f32.mrf.mxu3 }
 0x122   :  { %909 = vst [vmem:[#allocation7 + $0x20] sm:$0xff] %v893_v33  ;;  %v601_v25 = vadd.f32 %v600_v42, %v482_v28  ;;  %v487_v30 = vadd.f32 %v486_v11, %v367_v48 }
 0x124   :  { %v750_v62 = vadd.f32 %v749_v3, %v601_v25 }
 0x125   :  { %v850_v31 = vpop.f32.mrf.mxu1 }
 0x126   :  { %v847_v61 = vadd.f32 %v846_v18, %v750_v62 }
 0x127   :  { %v757_v50 = vpop.f32.mrf.mxu0 }
 0x128   :  { %v894_v56 = vmax.f32 %v847_v61, 0.0 }
 0x129   :  { %v491_v60 = vpop.f32.mrf.mxu2  ;;  %v606_v16 = vpop.f32.mrf.mxu3 }
 0x12a   :  { %910 = vst [vmem:[#allocation7 + $0x28] sm:$0xff] %v894_v56  ;;  %v607_v23 = vadd.f32 %v606_v16, %v487_v30  ;;  %v492_v49 = vadd.f32 %v491_v60, %v371_v15 }
 0x12c   :  { %v754_v47 = vadd.f32 %v753_v1, %v607_v23 }
 0x12d   :  { %v854_v54 = vpop.f32.mrf.mxu1 }
 0x12e   :  { %v851_v5 = vadd.f32 %v850_v31, %v754_v47 }
 0x12f   :  { %v761_v44 = vpop.f32.mrf.mxu0 }
 0x130   :  { %v895_v43 = vmax.f32 %v851_v5, 0.0 }
 0x131   :  { %v496_v6 = vpop.f32.mrf.mxu2  ;;  %v612_v4 = vpop.f32.mrf.mxu3 }
 0x132   :  { %911 = vst [vmem:[#allocation7 + $0x30] sm:$0xff] %v895_v43  ;;  %v613_v34 = vadd.f32 %v612_v4, %v492_v49  ;;  %v497_v39 = vadd.f32 %v496_v6, %v1556_v37 }
 0x134   :  { %v758_v45 = vadd.f32 %v757_v50, %v613_v34 }
 0x135   :  { %v858_v8 = vpop.f32.mrf.mxu1 }
 0x136   :  { %v855_v35 = vadd.f32 %v854_v54, %v758_v45 }
 0x137   :  { %v765_v14 = vpop.f32.mrf.mxu0 }
 0x138   :  { %v896_v20 = vmax.f32 %v855_v35, 0.0 }
 0x139   :  { %v501_v7 = vpop.f32.mrf.mxu2  ;;  %v618_v41 = vpop.f32.mrf.mxu3 }
 0x13a   :  { %912 = vst [vmem:[#allocation7 + $0x38] sm:$0xff] %v896_v20  ;;  %v619_v10 = vadd.f32 %v618_v41, %v497_v39  ;;  %v502_v2 = vadd.f32 %v501_v7, %v1568_v58 }
 0x13c   :  { %v762_v52 = vadd.f32 %v761_v44, %v619_v10 }
 0x13d   :  { %v862_v26 = vpop.f32.mrf.mxu1 }
 0x13e   :  { %v859_v22 = vadd.f32 %v858_v8, %v762_v52 }
 0x13f   :  { %v769_v40 = vpop.f32.mrf.mxu0 }
 0x140   :  { %v897_v63 = vmax.f32 %v859_v22, 0.0 }
 0x141   :  { %v506_v12 = vpop.f32.mrf.mxu2  ;;  %v624_v21 = vpop.f32.mrf.mxu3 }
 0x142   :  { %913 = vst [vmem:[#allocation7 + $0x40] sm:$0xff] %v897_v63  ;;  %v625_v3 = vadd.f32 %v624_v21, %v502_v2  ;;  %v507_v37 = vadd.f32 %v506_v12, %v1580_v24 }
 0x144   :  { %v766_v59 = vadd.f32 %v765_v14, %v625_v3 }
 0x145   :  { %v866_v32 = vpop.f32.mrf.mxu1 }
 0x146   :  { %v863_v57 = vadd.f32 %v862_v26, %v766_v59 }
 0x147   :  { %v773_v0 = vpop.f32.mrf.mxu0 }
 0x148   :  { %v898_v27 = vmax.f32 %v863_v57, 0.0 }
 0x149   :  { %v511_v38 = vpop.f32.mrf.mxu2  ;;  %v630_v17 = vpop.f32.mrf.mxu3 }
 0x14a   :  { %914 = vst [vmem:[#allocation7 + $0x48] sm:$0xff] %v898_v27  ;;  %v631_v18 = vadd.f32 %v630_v17, %v507_v37  ;;  %v512_v58 = vadd.f32 %v511_v38, %v1592_v53 }
 0x14c   :  { %v770_v13 = vadd.f32 %v769_v40, %v631_v18 }
 0x14d   :  { %v870_v9 = vpop.f32.mrf.mxu1 }
 0x14e   :  { %v867_v1 = vadd.f32 %v866_v32, %v770_v13 }
 0x14f   :  { %v777_v51 = vpop.f32.mrf.mxu0 }
 0x150   :  { %v899_v28 = vmax.f32 %v867_v1, 0.0 }
 0x151   :  { %v516_v33 = vpop.f32.mrf.mxu2  ;;  %v636_v11 = vpop.f32.mrf.mxu3 }
 0x152   :  { %915 = vst [vmem:[#allocation7 + $0x50] sm:$0xff] %v899_v28  ;;  %v637_v42 = vadd.f32 %v636_v11, %v512_v58  ;;  %v517_v31 = vadd.f32 %v516_v33, %v1604_v36 }
 0x154   :  { %v774_v25 = vadd.f32 %v773_v0, %v637_v42 }
 0x155   :  { %v874_v62 = vpop.f32.mrf.mxu1 }
 0x156   :  { %v871_v24 = vadd.f32 %v870_v9, %v774_v25 }
 0x157   :  { %v781_v60 = vpop.f32.mrf.mxu0 }
 0x158   :  { %v900_v48 = vmax.f32 %v871_v24, 0.0 }
 0x159   :  { %v521_v61 = vpop.f32.mrf.mxu2  ;;  %v642_v50 = vpop.f32.mrf.mxu3 }
 0x15a   :  { %916 = vst [vmem:[#allocation7 + $0x58] sm:$0xff] %v900_v48  ;;  %v643_v30 = vadd.f32 %v642_v50, %v517_v31  ;;  %v522_v55 = vadd.f32 %v521_v61, %v1616_v19 }
 0x15c   :  { %v778_v56 = vadd.f32 %v777_v51, %v643_v30 }
 0x15d   :  { %v878_v53 = vpop.f32.mrf.mxu1 }
 0x15e   :  { %v875_v16 = vadd.f32 %v874_v62, %v778_v56 }
 0x15f   :  { %v785_v49 = vpop.f32.mrf.mxu0 }
 0x160   :  { %v901_v23 = vmax.f32 %v875_v16, 0.0 }
 0x161   :  { %v648_v47 = vpop.f32.mrf.mxu3  ;;  %v526_v15 = vpop.f32.mrf.mxu2 }
 0x162   :  { %917 = vst [vmem:[#allocation7 + $0x60] sm:$0xff] %v901_v23  ;;  %v649_v54 = vadd.f32 %v648_v47, %v522_v55  ;;  %v527_v36 = vadd.f32 %v526_v15, %v1628_v46 }
 0x164   :  { %v782_v5 = vadd.f32 %v781_v60, %v649_v54 }
 0x165   :  { %v882_v4 = vpop.f32.mrf.mxu1 }
 0x166   :  { %v879_v44 = vadd.f32 %v878_v53, %v782_v5 }
 0x167   :  { %v789_v20 = vpop.f32.mrf.mxu0 }
 0x168   :  { %v902_v43 = vmax.f32 %v879_v44, 0.0 }
 0x169   :  { %v654_v6 = vpop.f32.mrf.mxu3  ;;  %v531_v8 = vpop.f32.mrf.mxu2 }
 0x16a   :  { %918 = vst [vmem:[#allocation7 + $0x68] sm:$0xff] %v902_v43  ;;  %v655_v34 = vadd.f32 %v654_v6, %v527_v36  ;;  %v532_v19 = vadd.f32 %v531_v8, %v1638_v29 }
 0x16c   :  { %v786_v45 = vadd.f32 %v785_v49, %v655_v34 }
 0x16d   :  { %v886_v41 = vpop.f32.mrf.mxu1 }
 0x16e   :  { %v883_v35 = vadd.f32 %v882_v4, %v786_v45 }
 0x170   :  { %v903_v14 = vmax.f32 %v883_v35, 0.0 }
 0x171   :  { %v660_v39 = vpop.f32.mrf.mxu3 }
 0x172   :  { %919 = vst [vmem:[#allocation7 + $0x70] sm:$0xff] %v903_v14  ;;  %v661_v7 = vadd.f32 %v660_v39, %v532_v19 }
 0x174   :  { %v790_v10 = vadd.f32 %v789_v20, %v661_v7 }
 0x176   :  { %v887_v46 = vadd.f32 %v886_v41, %v790_v10 }
 0x178   :  { %v904_v52 = vmax.f32 %v887_v46, 0.0 }
 0x17a   :  { %920 = vst [vmem:[#allocation7 + $0x78] sm:$0xff] %v904_v52 }
 0x17b   :  { %933 = dma.vmem_to_hbm [thread:$0]  %s926_s24, 2048, %s928_s27, [#allocation4], %s1058_s20, %s1058_s20, %s1059_s21  }
 0x17c   :  { %1055 = dma.done.wait [#allocation4], 2048  }
 0x17d   :  { %1056 = vsyncadd [#allocation4], 4294965248 }
 0x17e   :  { %938 = vsyncpa [#allocation3], 1 }
 0x17f   :  { %939 = vsyncpa [#allocation6], 1 }
 0x180   :  { %940 = vsyncpa [#allocation4], 1 }

</bundles_post_ra>
